<compile_context>
chip_gen: v5e
topology: v5e:2x2
jax: 0.10.0
libtpu: 0.0.40
codegen_flags: <defaults>
</compile_context>

<pallas_src>
import math

import jax
import jax.numpy as jnp
from jax.experimental import pallas as pl
from jax.experimental.pallas import tpu as pltpu


def _round_up(n, m):
    return ((n + m - 1) // m) * m


# ---------------------------------------------------------------------------
# Parameter init (module-faithful nn.Linear-style U(-1/sqrt(fan_in), 1/sqrt(fan_in)))
# ---------------------------------------------------------------------------
def init_params(key, dense_features, split_space, out_features, hidden_size, num_layers):
    n_splits = len(split_space)
    first_out_n = hidden_size if num_layers > 1 else out_features
    p = first_out_n // n_splits

    w_split, b_split = [], []
    for s in split_space:
        fan_in = dense_features + s
        k = 1.0 / math.sqrt(fan_in)
        key, kw, kb = jax.random.split(key, 3)
        w_split.append(jax.random.uniform(kw, (fan_in, p), jnp.float32, -k, k))
        b_split.append(jax.random.uniform(kb, (p,), jnp.float32, -k, k))

    # LinearPolicy(inp_n=p, out_n=out_features, hidden_size, num_layers-1): shared weights.
    mlp = []
    n_mlp = max(num_layers - 1, 0)
    last_in = p
    for l in range(n_mlp):
        out_n = out_features if l == n_mlp - 1 else hidden_size
        k = 1.0 / math.sqrt(last_in)
        key, kw, kb = jax.random.split(key, 3)
        mlp.append((jax.random.uniform(kw, (last_in, out_n), jnp.float32, -k, k),
                    jax.random.uniform(kb, (out_n,), jnp.float32, -k, k)))
        last_in = out_n
    return w_split, b_split, mlp


# ---------------------------------------------------------------------------
# One-time weight re-layout for the fused kernel (pure parameter packing).
# Produces a list of wide (rows, cols) weights + (1, cols) f32 biases, cols padded to
# a multiple of 128.  Padding rows/cols are exact zeros -> bit-exact padding.
# ---------------------------------------------------------------------------
def pack_params(w_split, b_split, mlp, dense_features, split_space, mxu_dtype=jnp.float32):
    n_splits = len(split_space)
    D = dense_features
    s_total = int(sum(split_space))
    p = w_split[0].shape[1]

    weights, biases, relu_flags = [], [], []

    # ---- layer 0: split layer over the fused input x = [dense | split] -------------
    P0 = _round_up(n_splits * p, 128)
    w0 = jnp.zeros((D + s_total, P0), jnp.float32)
    b0 = jnp.zeros((1, P0), jnp.float32)
    off = 0
    for i, s in enumerate(split_space):
        w0 = w0.at[:D, i * p:(i + 1) * p].set(w_split[i][:D, :])            # dense part
        w0 = w0.at[D + off:D + off + s, i * p:(i + 1) * p].set(w_split[i][D:D + s, :])
        b0 = b0.at[0, i * p:(i + 1) * p].set(b_split[i])
        off += s
    weights.append(w0)
    biases.append(b0)
    relu_flags.append(False)          # SplitLayer has no activation

    # ---- shared MLP, replicated block-diagonally (stays in the wide layout) --------
    n_mlp = len(mlp)
    prev_wide = P0
    for l, (w, b) in enumerate(mlp):
        in_n, out_n = w.shape
        P = _round_up(n_splits * out_n, 128)
        W = jnp.zeros((prev_wide, P), jnp.float32)
        Bv = jnp.zeros((1, P), jnp.float32)
        for i in range(n_splits):
            W = W.at[i * in_n:(i + 1) * in_n, i * out_n:(i + 1) * out_n].set(w)
            Bv = Bv.at[0, i * out_n:(i + 1) * out_n].set(b)
        weights.append(W)
        biases.append(Bv)
        relu_flags.append(l < n_mlp - 1)    # ReLU on hidden MLP layers only
        prev_wide = P

    out_n_final = mlp[-1][0].shape[1] if mlp else p
    # Pre-cast MXU operands at pack time (hoists all weight dtype converts out of the kernel).
    weights = [w.astype(mxu_dtype) for w in weights]
    return dict(weights=weights, biases=biases, relu_flags=tuple(relu_flags),
                n_splits=n_splits, out_n=out_n_final, mxu_dtype=mxu_dtype)


# ---------------------------------------------------------------------------
# Fused kernel: one chain of wide matmuls per batch tile, direct lane-dense writeback.
# ---------------------------------------------------------------------------
def _make_kernel(relu_flags, mxu_dtype):
    n_layers = len(relu_flags)

    def kernel(x_ref, *rest):
        out_ref = rest[2 * n_layers]
        h = x_ref[...]                                    # already in mxu_dtype
        for l in range(n_layers):
            w = rest[2 * l][...]                          # pre-cast to mxu_dtype at pack time
            b = rest[2 * l + 1][...]                      # f32
            h = jnp.dot(h, w, preferred_element_type=jnp.float32) + b     # f32 accumulate/bias
            if relu_flags[l]:
                h = jnp.maximum(h, 0.0)                   # f32 ReLU (v5e-safe)
            if l < n_layers - 1 and mxu_dtype != jnp.float32:
                h = h.astype(mxu_dtype)                   # only the activation needs a cast
        out_ref[...] = h.astype(out_ref.dtype)            # (tb, 128k) unmasked lane-dense store

    return kernel


def split_linear_policy_forward(dense_input, split_input, packed, batch_tile=None):
    weights, biases = packed["weights"], packed["biases"]
    relu_flags = packed["relu_flags"]
    n_splits, out_n = packed["n_splits"], packed["out_n"]
    mxu_dtype = packed["mxu_dtype"]
    P_last = weights[-1].shape[1]

    B = dense_input.shape[0]
    # Fused input slab [dense | split]; cast ONCE here so no input converts run in-kernel.
    x = jnp.concatenate([dense_input, split_input], axis=-1).astype(mxu_dtype)
    K = x.shape[1]
    assert K == weights[0].shape[0], (K, weights[0].shape)

    # Sublane-aligned batch tile (8 for 32-bit, 16 for 16-bit MXU operands); pad the batch.
    sub = 16 if jnp.dtype(mxu_dtype).itemsize == 2 else 8
    tb = _round_up(B if batch_tile is None else batch_tile, sub)
    B_pad = _round_up(B, tb)
    if B_pad != B:
        x = jnp.pad(x, ((0, B_pad - B), (0, 0)))
    grid = (B_pad // tb,)

    flat = [v for wb in zip(weights, biases) for v in wb]

    # VMEM budget from actual block sizes (worst case: weights double-buffered on fallback).
    def _nbytes(a):
        return int(a.size) * a.dtype.itemsize
    weight_bytes = sum(_nbytes(a) for a in flat)
    stream_bytes = 2 * (tb * K * jnp.dtype(mxu_dtype).itemsize + tb * P_last * 4)
    vmem_limit = int(1.25 * (2 * weight_bytes + stream_bytes)) + (2 << 20)
    vmem_limit = min(max(vmem_limit, 32 << 20), 64 << 20)     # stay under v7x's 64 MiB

    flops = sum(2 * B_pad * w.shape[0] * w.shape[1] for w in weights)
    bytes_accessed = _nbytes(x) + weight_bytes + B_pad * P_last * 4
    cost = pl.CostEstimate(flops=int(flops), transcendentals=0,
                           bytes_accessed=int(bytes_accessed))

    def run(single_buffer_weights):
        wkw = dict(pipeline_mode=pl.Buffered(1)) if single_buffer_weights else {}
        in_specs = [pl.BlockSpec((tb, K), lambda i: (i, 0))]
        for arr in flat:
            # Constant index_map -> block resident across all grid steps.
            in_specs.append(pl.BlockSpec(arr.shape, lambda i: (0, 0), **wkw))
        out_specs = pl.BlockSpec((tb, P_last), lambda i: (i, 0))
        return pl.pallas_call(
            _make_kernel(relu_flags, mxu_dtype),
            out_shape=jax.ShapeDtypeStruct((B_pad, P_last), jnp.float32),
            grid=grid,
            in_specs=in_specs,
            out_specs=out_specs,
            compiler_params=pltpu.CompilerParams(
                # Batch tiles are independent -> shardable across v7x's 2 TensorCores.
                dimension_semantics=("parallel",),
                vmem_limit_bytes=vmem_limit),
            cost_estimate=cost,
        )(x, *flat)

    try:
        out_wide = run(True)        # constant weights single-buffered (saves VMEM)
    except Exception:
        # pipeline_mode=pl.Buffered(1) unsupported on this jax version -> default 2-deep
        # buffering (costs extra weight VMEM only; numerics identical).
        out_wide = run(False)

    # Strip batch padding and the lane padding of the final wide layer.
    return out_wide[:B, :n_splits * out_n]


# ---------------------------------------------------------------------------
# Pure-JAX reference mirroring the PyTorch module (f32 end to end).
# ---------------------------------------------------------------------------
def reference_forward(dense_input, split_input, split_space, w_split, b_split, mlp):
    outs, off = [], 0
    n_mlp = len(mlp)
    for i, s in enumerate(split_space):
        x = jnp.concatenate([dense_input, split_input[:, off:off + s]], axis=-1)
        h = x @ w_split[i] + b_split[i]
        for l, (w, b) in enumerate(mlp):
            h = h @ w + b
            if l < n_mlp - 1:
                h = jnp.maximum(h, 0.0)
        outs.append(h)
        off += s
    return jnp.concatenate(outs, axis=-1)


if __name__ == "__main__":
    # Small config consistent with the module.
    B = 16
    dense_features = 8
    split_space = (6, 4, 5, 3)       # heterogeneous split sizes (sum = 18)
    out_features = 5
    hidden_size = 32
    num_layers = 3                   # activation_fn = nn.ReLU

    key = jax.random.PRNGKey(0)
    key, kd, ks = jax.random.split(key, 3)
    dense_input = jax.random.normal(kd, (B, dense_features), jnp.float32)
    split_input = jax.random.normal(ks, (B, sum(split_space)), jnp.float32)

    w_split, b_split, mlp = init_params(
        key, dense_features, split_space, out_features, hidden_size, num_layers)
    ref = reference_forward(dense_input, split_input, split_space, w_split, b_split, mlp)

    # f32 run, batch_tile=8 -> grid=(2,) "parallel" (v7x dual-TC path); strict check.
    packed_f32 = pack_params(w_split, b_split, mlp, dense_features, split_space,
                             mxu_dtype=jnp.float32)
    out_f32 = split_linear_policy_forward(dense_input, split_input, packed_f32,
                                          batch_tile=8)
    out_f32 = jax.block_until_ready(out_f32)
    assert out_f32.shape == (B, len(split_space) * out_features), out_f32.shape
    assert jnp.allclose(out_f32, ref, atol=1e-4, rtol=1e-4), "f32 mismatch vs reference"

    # Odd/small batch (B=2): wrapper pads the batch to one sublane-aligned tile, grid=(1,)
    # (the single-maximal-tile path recommended for v5e/v6e).
    out_small = split_linear_policy_forward(dense_input[:2], split_input[:2], packed_f32)
    out_small = jax.block_until_ready(out_small)
    assert out_small.shape == (2, len(split_space) * out_features), out_small.shape
    assert jnp.allclose(out_small, ref[:2], atol=1e-4, rtol=1e-4), "small-batch mismatch"

    # bf16-MXU run: weights pre-cast to bf16 at pack time (no in-kernel weight converts),
    # f32 accumulation / bias / ReLU.  Loose tolerance against the f32 reference.
    packed_bf16 = pack_params(w_split, b_split, mlp, dense_features, split_space,
                              mxu_dtype=jnp.bfloat16)
    out_bf16 = split_linear_policy_forward(dense_input, split_input, packed_bf16,
                                           batch_tile=8)   # rounded up to 16 for bf16
    out_bf16 = jax.block_until_ready(out_bf16)
    assert out_bf16.shape == (B, len(split_space) * out_features), out_bf16.shape
    assert jnp.allclose(out_bf16, ref, atol=1e-1, rtol=1e-1), "bf16 mismatch vs reference"

    print("KERNEL_OK")
</pallas_src>

<mosaic_0001>
module attributes {stable_mosaic.version = 11 : i64} {
  func.func @kernel(%arg0: i32, %arg1: memref<8x26xf32, #tpu.memory_space<vmem>>, %arg2: memref<26x128xf32, #tpu.memory_space<vmem>>, %arg3: memref<1x128xf32, #tpu.memory_space<vmem>>, %arg4: memref<128x128xf32, #tpu.memory_space<vmem>>, %arg5: memref<1x128xf32, #tpu.memory_space<vmem>>, %arg6: memref<128x128xf32, #tpu.memory_space<vmem>>, %arg7: memref<1x128xf32, #tpu.memory_space<vmem>>, %arg8: memref<8x128xf32, #tpu.memory_space<vmem>>) attributes {dimension_semantics = [#tpu.dimension_semantics<parallel>], iteration_bounds = array<i64: 2>, scalar_prefetch = 0 : i64, scratch_operands = 0 : i64, tpu.core_type = #tpu.core_type<tc>, window_params = [{transform_indices = @transform_0, window_bounds = array<i64: 8, 26>}, {pipeline_mode = #tpu.pipeline_mode<synchronous>, transform_indices = @transform_1, window_bounds = array<i64: 26, 128>}, {pipeline_mode = #tpu.pipeline_mode<synchronous>, transform_indices = @transform_2, window_bounds = array<i64: 1, 128>}, {pipeline_mode = #tpu.pipeline_mode<synchronous>, transform_indices = @transform_3, window_bounds = array<i64: 128, 128>}, {pipeline_mode = #tpu.pipeline_mode<synchronous>, transform_indices = @transform_4, window_bounds = array<i64: 1, 128>}, {pipeline_mode = #tpu.pipeline_mode<synchronous>, transform_indices = @transform_5, window_bounds = array<i64: 128, 128>}, {pipeline_mode = #tpu.pipeline_mode<synchronous>, transform_indices = @transform_6, window_bounds = array<i64: 1, 128>}, {transform_indices = @transform_7, window_bounds = array<i64: 8, 128>}]} {
    %c0 = arith.constant 0 : index
    %c0_0 = arith.constant 0 : index
    %0 = vector.load %arg1[%c0, %c0_0] : memref<8x26xf32, #tpu.memory_space<vmem>>, vector<8x26xf32>
    %c0_1 = arith.constant 0 : index
    %c0_2 = arith.constant 0 : index
    %1 = vector.load %arg2[%c0_1, %c0_2] : memref<26x128xf32, #tpu.memory_space<vmem>>, vector<26x128xf32>
    %c0_3 = arith.constant 0 : index
    %c0_4 = arith.constant 0 : index
    %2 = vector.load %arg3[%c0_3, %c0_4] : memref<1x128xf32, #tpu.memory_space<vmem>>, vector<1x128xf32>
    %cst = arith.constant dense<0.000000e+00> : vector<8x128xf32>
    %3 = tpu.matmul %0, %1, %cst {dimension_numbers = #tpu.dot_dimension_numbers<[1], [0], [0], [1], [0, 0, 1, 1], [], []>} : vector<8x26xf32>, vector<26x128xf32>, vector<8x128xf32> -> vector<8x128xf32>
    %4 = vector.broadcast %2 : vector<1x128xf32> to vector<8x128xf32>
    %5 = arith.addf %3, %4 : vector<8x128xf32>
    %c0_5 = arith.constant 0 : index
    %c0_6 = arith.constant 0 : index
    %6 = vector.load %arg4[%c0_5, %c0_6] : memref<128x128xf32, #tpu.memory_space<vmem>>, vector<128x128xf32>
    %c0_7 = arith.constant 0 : index
    %c0_8 = arith.constant 0 : index
    %7 = vector.load %arg5[%c0_7, %c0_8] : memref<1x128xf32, #tpu.memory_space<vmem>>, vector<1x128xf32>
    %cst_9 = arith.constant dense<0.000000e+00> : vector<8x128xf32>
    %8 = tpu.matmul %5, %6, %cst_9 {dimension_numbers = #tpu.dot_dimension_numbers<[1], [0], [0], [1], [0, 0, 1, 1], [], []>} : vector<8x128xf32>, vector<128x128xf32>, vector<8x128xf32> -> vector<8x128xf32>
    %9 = vector.broadcast %7 : vector<1x128xf32> to vector<8x128xf32>
    %10 = arith.addf %8, %9 : vector<8x128xf32>
    %cst_10 = arith.constant 0.000000e+00 : f32
    %11 = vector.broadcast %cst_10 : f32 to vector<8x128xf32>
    %12 = arith.maximumf %10, %11 : vector<8x128xf32>
    %c0_11 = arith.constant 0 : index
    %c0_12 = arith.constant 0 : index
    %13 = vector.load %arg6[%c0_11, %c0_12] : memref<128x128xf32, #tpu.memory_space<vmem>>, vector<128x128xf32>
    %c0_13 = arith.constant 0 : index
    %c0_14 = arith.constant 0 : index
    %14 = vector.load %arg7[%c0_13, %c0_14] : memref<1x128xf32, #tpu.memory_space<vmem>>, vector<1x128xf32>
    %cst_15 = arith.constant dense<0.000000e+00> : vector<8x128xf32>
    %15 = tpu.matmul %12, %13, %cst_15 {dimension_numbers = #tpu.dot_dimension_numbers<[1], [0], [0], [1], [0, 0, 1, 1], [], []>} : vector<8x128xf32>, vector<128x128xf32>, vector<8x128xf32> -> vector<8x128xf32>
    %16 = vector.broadcast %14 : vector<1x128xf32> to vector<8x128xf32>
    %17 = arith.addf %15, %16 : vector<8x128xf32>
    %c0_16 = arith.constant 0 : index
    %c0_17 = arith.constant 0 : index
    %18 = vector.load %arg8[%c0_16, %c0_17] : memref<8x128xf32, #tpu.memory_space<vmem>>, vector<8x128xf32>
    tpu.vector_store %arg8[%c0_16, %c0_17], %17 {strides = array<i32>} : memref<8x128xf32, #tpu.memory_space<vmem>>, vector<8x128xf32>,
    return
  }
  func.func @transform_0(%arg0: i32) -> (i32, i32) {
    %c0_i32 = arith.constant 0 : i32
    %c0_i32_0 = arith.constant 0 : i32
    return %arg0, %c0_i32 : i32, i32
  }
  func.func @transform_1(%arg0: i32) -> (i32, i32) {
    %c0_i32 = arith.constant 0 : i32
    %c0_i32_0 = arith.constant 0 : i32
    %c0_i32_1 = arith.constant 0 : i32
    return %c0_i32, %c0_i32_0 : i32, i32
  }
  func.func @transform_2(%arg0: i32) -> (i32, i32) {
    %c0_i32 = arith.constant 0 : i32
    %c0_i32_0 = arith.constant 0 : i32
    %c0_i32_1 = arith.constant 0 : i32
    return %c0_i32, %c0_i32_0 : i32, i32
  }
  func.func @transform_3(%arg0: i32) -> (i32, i32) {
    %c0_i32 = arith.constant 0 : i32
    %c0_i32_0 = arith.constant 0 : i32
    %c0_i32_1 = arith.constant 0 : i32
    return %c0_i32, %c0_i32_0 : i32, i32
  }
  func.func @transform_4(%arg0: i32) -> (i32, i32) {
    %c0_i32 = arith.constant 0 : i32
    %c0_i32_0 = arith.constant 0 : i32
    %c0_i32_1 = arith.constant 0 : i32
    return %c0_i32, %c0_i32_0 : i32, i32
  }
  func.func @transform_5(%arg0: i32) -> (i32, i32) {
    %c0_i32 = arith.constant 0 : i32
    %c0_i32_0 = arith.constant 0 : i32
    %c0_i32_1 = arith.constant 0 : i32
    return %c0_i32, %c0_i32_0 : i32, i32
  }
  func.func @transform_6(%arg0: i32) -> (i32, i32) {
    %c0_i32 = arith.constant 0 : i32
    %c0_i32_0 = arith.constant 0 : i32
    %c0_i32_1 = arith.constant 0 : i32
    return %c0_i32, %c0_i32_0 : i32, i32
  }
  func.func @transform_7(%arg0: i32) -> (i32, i32) {
    %c0_i32 = arith.constant 0 : i32
    %c0_i32_0 = arith.constant 0 : i32
    return %arg0, %c0_i32 : i32, i32
  }
}

module attributes {stable_mosaic.version = 11 : i64} {
  func.func @kernel(%arg0: i32, %arg1: memref<8x26xf32, #tpu.memory_space<vmem>>, %arg2: memref<26x128xf32, #tpu.memory_space<vmem>>, %arg3: memref<1x128xf32, #tpu.memory_space<vmem>>, %arg4: memref<128x128xf32, #tpu.memory_space<vmem>>, %arg5: memref<1x128xf32, #tpu.memory_space<vmem>>, %arg6: memref<128x128xf32, #tpu.memory_space<vmem>>, %arg7: memref<1x128xf32, #tpu.memory_space<vmem>>, %arg8: memref<8x128xf32, #tpu.memory_space<vmem>>) attributes {dimension_semantics = [#tpu.dimension_semantics<parallel>], iteration_bounds = array<i64: 2>, scalar_prefetch = 0 : i64, scratch_operands = 0 : i64, tpu.core_type = #tpu.core_type<tc>, window_params = [{transform_indices = @transform_0, window_bounds = array<i64: 8, 26>}, {pipeline_mode = #tpu.pipeline_mode<synchronous>, transform_indices = @transform_1, window_bounds = array<i64: 26, 128>}, {pipeline_mode = #tpu.pipeline_mode<synchronous>, transform_indices = @transform_2, window_bounds = array<i64: 1, 128>}, {pipeline_mode = #tpu.pipeline_mode<synchronous>, transform_indices = @transform_3, window_bounds = array<i64: 128, 128>}, {pipeline_mode = #tpu.pipeline_mode<synchronous>, transform_indices = @transform_4, window_bounds = array<i64: 1, 128>}, {pipeline_mode = #tpu.pipeline_mode<synchronous>, transform_indices = @transform_5, window_bounds = array<i64: 128, 128>}, {pipeline_mode = #tpu.pipeline_mode<synchronous>, transform_indices = @transform_6, window_bounds = array<i64: 1, 128>}, {transform_indices = @transform_7, window_bounds = array<i64: 8, 128>}]} {
    %c0 = arith.constant 0 : index
    %c0_0 = arith.constant 0 : index
    %0 = vector.load %arg1[%c0, %c0_0] : memref<8x26xf32, #tpu.memory_space<vmem>>, vector<8x26xf32>
    %c0_1 = arith.constant 0 : index
    %c0_2 = arith.constant 0 : index
    %1 = vector.load %arg2[%c0_1, %c0_2] : memref<26x128xf32, #tpu.memory_space<vmem>>, vector<26x128xf32>
    %c0_3 = arith.constant 0 : index
    %c0_4 = arith.constant 0 : index
    %2 = vector.load %arg3[%c0_3, %c0_4] : memref<1x128xf32, #tpu.memory_space<vmem>>, vector<1x128xf32>
    %cst = arith.constant dense<0.000000e+00> : vector<8x128xf32>
    %3 = tpu.matmul %0, %1, %cst {dimension_numbers = #tpu.dot_dimension_numbers<[1], [0], [0], [1], [0, 0, 1, 1], [], []>} : vector<8x26xf32>, vector<26x128xf32>, vector<8x128xf32> -> vector<8x128xf32>
    %4 = vector.broadcast %2 : vector<1x128xf32> to vector<8x128xf32>
    %5 = arith.addf %3, %4 : vector<8x128xf32>
    %c0_5 = arith.constant 0 : index
    %c0_6 = arith.constant 0 : index
    %6 = vector.load %arg4[%c0_5, %c0_6] : memref<128x128xf32, #tpu.memory_space<vmem>>, vector<128x128xf32>
    %c0_7 = arith.constant 0 : index
    %c0_8 = arith.constant 0 : index
    %7 = vector.load %arg5[%c0_7, %c0_8] : memref<1x128xf32, #tpu.memory_space<vmem>>, vector<1x128xf32>
    %cst_9 = arith.constant dense<0.000000e+00> : vector<8x128xf32>
    %8 = tpu.matmul %5, %6, %cst_9 {dimension_numbers = #tpu.dot_dimension_numbers<[1], [0], [0], [1], [0, 0, 1, 1], [], []>} : vector<8x128xf32>, vector<128x128xf32>, vector<8x128xf32> -> vector<8x128xf32>
    %9 = vector.broadcast %7 : vector<1x128xf32> to vector<8x128xf32>
    %10 = arith.addf %8, %9 : vector<8x128xf32>
    %cst_10 = arith.constant 0.000000e+00 : f32
    %11 = vector.broadcast %cst_10 : f32 to vector<8x128xf32>
    %12 = arith.maximumf %10, %11 : vector<8x128xf32>
    %c0_11 = arith.constant 0 : index
    %c0_12 = arith.constant 0 : index
    %13 = vector.load %arg6[%c0_11, %c0_12] : memref<128x128xf32, #tpu.memory_space<vmem>>, vector<128x128xf32>
    %c0_13 = arith.constant 0 : index
    %c0_14 = arith.constant 0 : index
    %14 = vector.load %arg7[%c0_13, %c0_14] : memref<1x128xf32, #tpu.memory_space<vmem>>, vector<1x128xf32>
    %cst_15 = arith.constant dense<0.000000e+00> : vector<8x128xf32>
    %15 = tpu.matmul %12, %13, %cst_15 {dimension_numbers = #tpu.dot_dimension_numbers<[1], [0], [0], [1], [0, 0, 1, 1], [], []>} : vector<8x128xf32>, vector<128x128xf32>, vector<8x128xf32> -> vector<8x128xf32>
    %16 = vector.broadcast %14 : vector<1x128xf32> to vector<8x128xf32>
    %17 = arith.addf %15, %16 : vector<8x128xf32>
    %c0_16 = arith.constant 0 : index
    %c0_17 = arith.constant 0 : index
    %18 = vector.load %arg8[%c0_16, %c0_17] : memref<8x128xf32, #tpu.memory_space<vmem>>, vector<8x128xf32>
    tpu.vector_store %arg8[%c0_16, %c0_17], %17 {strides = array<i32>} : memref<8x128xf32, #tpu.memory_space<vmem>>, vector<8x128xf32>,
    return
  }
  func.func @transform_0(%arg0: i32) -> (i32, i32) {
    %c0_i32 = arith.constant 0 : i32
    %c0_i32_0 = arith.constant 0 : i32
    return %arg0, %c0_i32 : i32, i32
  }
  func.func @transform_1(%arg0: i32) -> (i32, i32) {
    %c0_i32 = arith.constant 0 : i32
    %c0_i32_0 = arith.constant 0 : i32
    %c0_i32_1 = arith.constant 0 : i32
    return %c0_i32, %c0_i32_0 : i32, i32
  }
  func.func @transform_2(%arg0: i32) -> (i32, i32) {
    %c0_i32 = arith.constant 0 : i32
    %c0_i32_0 = arith.constant 0 : i32
    %c0_i32_1 = arith.constant 0 : i32
    return %c0_i32, %c0_i32_0 : i32, i32
  }
  func.func @transform_3(%arg0: i32) -> (i32, i32) {
    %c0_i32 = arith.constant 0 : i32
    %c0_i32_0 = arith.constant 0 : i32
    %c0_i32_1 = arith.constant 0 : i32
    return %c0_i32, %c0_i32_0 : i32, i32
  }
  func.func @transform_4(%arg0: i32) -> (i32, i32) {
    %c0_i32 = arith.constant 0 : i32
    %c0_i32_0 = arith.constant 0 : i32
    %c0_i32_1 = arith.constant 0 : i32
    return %c0_i32, %c0_i32_0 : i32, i32
  }
  func.func @transform_5(%arg0: i32) -> (i32, i32) {
    %c0_i32 = arith.constant 0 : i32
    %c0_i32_0 = arith.constant 0 : i32
    %c0_i32_1 = arith.constant 0 : i32
    return %c0_i32, %c0_i32_0 : i32, i32
  }
  func.func @transform_6(%arg0: i32) -> (i32, i32) {
    %c0_i32 = arith.constant 0 : i32
    %c0_i32_0 = arith.constant 0 : i32
    %c0_i32_1 = arith.constant 0 : i32
    return %c0_i32, %c0_i32_0 : i32, i32
  }
  func.func @transform_7(%arg0: i32) -> (i32, i32) {
    %c0_i32 = arith.constant 0 : i32
    %c0_i32_0 = arith.constant 0 : i32
    return %arg0, %c0_i32 : i32, i32
  }
}

</mosaic_0001>

<bundles_post_ra>
// kernel: tpu_custom_call.1
= control target key start
LH: loop header
LB: loop body
LE: loop exit
PB: predicated region body
PF: predicated region fallthrough
CT: control target
= control target key end

     0   :  { %s1092_s0 = inlined_call_operand.hbm [shape: f32[16,26], index: 0, kind: input, shape index: {}]   ;;  %s1093_s1 = inlined_call_operand.hbm [shape: f32[26,128], index: 1, kind: input, shape index: {}]   ;;  %s1094_s2 = inlined_call_operand.vmem [shape: f32[1,128], index: 2, kind: input, shape index: {}]   ;;  %s1095_s3 = inlined_call_operand.hbm [shape: f32[128,128], index: 3, kind: input, shape index: {}]   ;;  %s1096_s4 = inlined_call_operand.vmem [shape: f32[1,128], index: 4, kind: input, shape index: {}]   ;;  %s1097_s5 = inlined_call_operand.hbm [shape: f32[128,128], index: 5, kind: input, shape index: {}]   ;;  %s1098_s6 = inlined_call_operand.vmem [shape: f32[1,128], index: 6, kind: input, shape index: {}]   ;;  %s1099_s7 = inlined_call_operand.hbm [shape: f32[16,128], index: 7, kind: output, shape index: {}]  }
   0x1   :  { %1100 = sst [smem:[#allocation15_spill]] %s1093_s1 }
   0x2   :  { %12 = vsyncpa [#allocation3], 0 }
   0x3   :  { %14 = vsyncpa [#allocation3 + $0x1], 0 }
   0x4   :  { %15 = vsyncpa [#allocation6], 0 }
   0x5   :  { %16 = vsyncpa [#allocation9], 0 }
   0x6   :  { %17 = vsyncpa [#allocation4], 0 }
   0x7   :  { %19 = vsyncpa [#allocation4 + $0x1], 0  ;;  %s923_s24 = smov 0   ;;  %s925_s25 = smov 0  }
   0x8   :  { %s927_s26 = smov 0   ;;  %s929_s27 = smov 0  }
   0x9 LB: > { %s1101_s1 = sld [smem:[#allocation15_spill]]  ;;  %s947_s8 = sadd.s32 4294967295, %s876_s27   ;;  %s876_s27 = sphi %s929_s27, %s1112_s27   ;;  %s872_s26 = sphi %s927_s26, %s1111_s26   ;;  %s868_s25 = sphi %s925_s25, %s1110_s25   ;;  %s864_s24 = sphi %s923_s24, %s1109_s24  }
   0xa   : > { %p581_p0 = scmp.ge.s32.totalorder %s876_s27, 1  ;;  %p46_p1 = scmp.eq.s32.totalorder %s947_s8, 0 }
   0xb   : > { %p208_p2 = scmp.lt.s32.totalorder %s876_s27, 3  ;;  %s878_s10 = smov [#allocation5]  }
   0xc   : > { %s221_s11 = sshll.u32 %s878_s10, 4  ;;  %s236_s14 = sshll.u32 %s1095_s3, 4  ;;  %s222_s11 = int_to_ptr.vmem [resolvable:$true] %s221_s11  ;;  %s237_s14 = int_to_ptr.hbm [resolvable:$true] %s236_s14 }
   0xd   : > { %p952_p3 = pnand %p581_p0, %p208_p2  ;;  %s253_s18 = sshll.u32 %s1097_s5, 4  ;;  %s254_s18 = int_to_ptr.hbm [resolvable:$true] %s253_s18 }
   0xe   : > { %s879_s19 = smov [#allocation7]   ;;  %s880_s21 = smov 128  }
   0xf   : > { %s219_s30 = sshll.u32 %s1101_s1, 4  ;;  %p616_p4 = pneg %p952_p3  ;;  %s220_s30 = int_to_ptr.hbm [resolvable:$true] %s219_s30 }
  0x10   : > { %s238_s20 = sshll.u32 %s879_s19, 4  ;;  %s881_s22 = smov 8   ;;  %s239_s20 = int_to_ptr.vmem [resolvable:$true] %s238_s20 }
  0x11   : > { %p964_p6 = pnand %p616_p4, %p46_p1  ;;  %s882_s23 = smov [#allocation8]  }
  0x12   : > { %s255_s28 = sshll.u32 %s882_s23, 4  ;;  %s580_s29 = sadd.s32 4294967294, %s876_s27   ;;  %s256_s28 = int_to_ptr.vmem [resolvable:$true] %s255_s28 }
  0x13   : > { %619 = dma.hbm_to_vmem [thread:$0]  (!%p964_p6), %s220_s30, 512, %s222_s11, [#allocation6], %s880_s21, %s880_s21, %s881_s22  }
  0x14   : > { %622 = dma.hbm_to_vmem [thread:$0]  (!%p964_p6), %s237_s14, 2048, %s239_s20, [#allocation6], %s880_s21, %s880_s21, %s881_s22  }
  0x15   : > { %625 = dma.hbm_to_vmem [thread:$0]  (!%p964_p6), %s254_s18, 2048, %s256_s28, [#allocation9], %s880_s21, %s880_s21, %s881_s22  }
  0x16   : > { %s979_s10 = sadd.s32 1, %s876_s27   ;;  %s32_s12 = sadd.s32 1, %s872_s26 }
  0x17   : > { %s29_s30 = ssub.s32 %s876_s27, %s979_s10  ;;  %p39_p7 = scmp.ne.s32.totalorder %s872_s26, %s868_s25 }
  0x18   : > { %p30_p8 = scmp.eq.s32.totalorder %s29_s30, 0  ;;  %p40_p9 = scmp.eq.s32.totalorder %s876_s27, 0 }
  0x19   : > { %p45_p10 = scmp.ne.s32.totalorder %s868_s25, %s864_s24  ;;  %p195_p11 = scmp.eq.s32.totalorder %s947_s8, 1 }
  0x1a   : > { %s991_s11 = scalar_select %p30_p8, %s872_s26, %s32_s12  }
  0x1b   : > { %p995_p12 = por %p46_p1, %p45_p10  ;;  %p999_p13 = por %p195_p11, %p39_p7 }
  0x1c   : > { %p201_p0 = scmp.eq.s32.totalorder %s580_s29, 1  ;;  %p41_p2 = por %p40_p9, %p39_p7 }
  0x1d   : > { %s272_s15 = sand.u32 1, %s872_s26   ;;  %p637_p6 = scmp.lt.s32.totalorder %s876_s27, 2 }
  0x1e   : > { %p1004_p4 = por %p201_p0, %p45_p10  ;;  %s586_s17 = sshll.u32 %s272_s15, 3 }
  0x1f   : > { %s587_s18 = sshll.u32 %s876_s27, 3  ;;  %s276_s23 = scalar_lea.vmem [#allocation2], %s586_s17 }
  0x20   : > { %s280_s21 = scalar_lea.hbm %s1092_s0, %s587_s18  ;;  %s284_s28 = sshll.u32 %s276_s23, 4  ;;  %s285_s28 = int_to_ptr.vmem [resolvable:$true] %s284_s28 }
  0x21   : > { %s282_s22 = sshll.u32 %s280_s21, 4  ;;  %p1013_p8 = pnand %p637_p6, %p41_p2  ;;  %s283_s22 = int_to_ptr.hbm [resolvable:$true] %s282_s22 }
  0x22   : > { %s273_s12 = scalar_lea.sflag [#allocation3], %s272_s15  ;;  %s772_s30 = sshra.s32 %s283_s22, 4  ;;  %s773_s30 = int_to_ptr.hbm [resolvable:$true] %s772_s30 }
  0x23   : > { %s774_s1 = scalar_lea.hbm %s773_s30, 8  ;;  %p776_p9 = pneg %p1013_p8 }
  0x24   : > { %p775_p7 = scmp.ne.s32.totalorder %s773_s30, %s774_s1  ;;  %s779_s17 = scalar_lea.hbm %s1092_s0, 16 }
  0x25   : > { %p780_p0 = scmp.lt.s32.totalorder %s773_s30, %s1092_s0  ;;  %p781_p2 = scmp.lt.s32.totalorder %s779_s17, %s774_s1 }
  0x26   : > { %p777_p10 = pnand %p776_p9, %p775_p7 }
  0x27   : > { %p782_p6 = por %p781_p2, %p780_p0 }
  0x28   : > { %p778_p11 = pneg %p777_p10 }
  0x2a   : > { %p783_p5 = pnand %p782_p6, %p778_p11 }
  0x2c   : > { %786 = shalt.err (!%p783_p5)
}
  0x2d   : > { %629 = dma.hbm_to_vmem [thread:$0]  (!%p1013_p8), %s283_s22, 128, %s285_s28, %s273_s12  }
  0x2e   : > { %293 = sbr.rel (%p952_p3) target bundleno = 459 (0x1cb), region = 48  ;;  %s1030_s15 = sand.u32 (!%p952_p3), 1, %s868_s25  }
  0x2f   : > { %s589_s23 = sshll.u32 (!%p952_p3), %s1030_s15, 3  ;;  %s296_s18 = scalar_lea.sflag (!%p952_p3), [#allocation3], %s1030_s15 }
  0x30   : > { %s299_s1 = scalar_lea.vmem (!%p952_p3), [#allocation2], %s589_s23 }
  0x33   : > { %847 = dma.done.wait (%p995_p12), %s296_s18, 128  }
  0x34   : > { %849 = vsyncadd (%p995_p12), %s296_s18, 4294967168 }
  0x35   : > { %851 = dma.done.wait (%p46_p1), [#allocation6], 2560  }
  0x36   : > { %853 = vsyncadd (%p46_p1), [#allocation6], 4294964736 }
  0x37   : > { %855 = dma.done.wait (%p46_p1), [#allocation9], 2048  }
  0x38   : > { %857 = vsyncadd (%p46_p1), [#allocation9], 4294965248  ;;  %vm359_vm0 = vcmask 1041408   ;;  %v350_v0 = vld [vmem:[#allocation5 + $0x18] sm:$0x3]  ;;  %v349_v1 = vld [vmem:[#allocation5 + $0x10] sm:$0xff] }
  0x39   : > { %594 = vmatpush.msk.msra.mxu0 %vm359_vm0, %v350_v0  ;;  %v398_v2 = vld [vmem:[#allocation7 + $0x78] sm:$0xff]  ;;  %v348_v3 = vld [vmem:[#allocation5 + $0x8] sm:$0xff]  ;;  %v397_v4 = vld [vmem:[#allocation7 + $0x70] sm:$0xff]  ;;  %vm355_vm1 = vcmask 211968   ;;  %s597_s29 = sshll.u32 %s947_s8, 3  ;;  %s345_s21 = scalar_lea.vmem [#allocation10], %s589_s23 }
  0x3a   : > { %403 = vmatpush.msra.mxu1 %v398_v2  ;;  %v396_v5 = vld [vmem:[#allocation7 + $0x68] sm:$0xff]  ;;  %v347_v6 = vld [vmem:[#allocation5] sm:$0xff]  ;;  %v346_v7 = vld [vmem:[%s299_s1] sm:$0xff]  ;;  %s476_s19 = scalar_lea.hbm %s1099_s7, %s597_s29  ;;  %s478_s18 = sshll.u32 %s345_s21, 4  ;;  %s479_s18 = int_to_ptr.vmem [resolvable:$true] %s478_s18 }
  0x3b   : > { %376 = vmatpush.msra.mxu0 %v349_v1  ;;  %v395_v8 = vld [vmem:[#allocation7 + $0x60] sm:$0xff]  ;;  %v394_v9 = vld [vmem:[#allocation7 + $0x58] sm:$0xff]  ;;  %v393_v10 = vld [vmem:[#allocation7 + $0x50] sm:$0xff]  ;;  %s480_s1 = sshll.u32 %s476_s19, 4  ;;  %s466_s9 = scalar_lea.sflag [#allocation4], %s1030_s15  ;;  %s481_s1 = int_to_ptr.hbm [resolvable:$true] %s480_s1 }
  0x3c   : > { %404 = vmatpush.msra.mxu1 %v397_v4  ;;  %v392_v11 = vld [vmem:[#allocation7 + $0x48] sm:$0xff]  ;;  %v391_v12 = vld [vmem:[#allocation7 + $0x40] sm:$0xff]  ;;  %v390_v13 = vld [vmem:[#allocation7 + $0x38] sm:$0xff]  ;;  %s816_s8 = sshra.s32 %s481_s1, 4  ;;  %s822_s29 = scalar_lea.hbm %s1099_s7, 16  ;;  %s817_s8 = int_to_ptr.hbm [resolvable:$true] %s816_s8 }
  0x3d   : > { %377 = vmatpush.msra.mxu0 %v348_v3  ;;  %v389_v14 = vld [vmem:[#allocation7 + $0x30] sm:$0xff]  ;;  %v388_v15 = vld [vmem:[#allocation7 + $0x28] sm:$0xff]  ;;  %v387_v16 = vld [vmem:[#allocation7 + $0x20] sm:$0xff]  ;;  %s818_s13 = scalar_lea.hbm %s817_s8, 8  ;;  %p823_p12 = scmp.lt.s32.totalorder %s817_s8, %s1099_s7 }
  0x3e   : > { %405 = vmatpush.msra.mxu1 %v396_v5  ;;  %v386_v17 = vld [vmem:[#allocation7 + $0x18] sm:$0xff]  ;;  %v385_v18 = vld [vmem:[#allocation7 + $0x10] sm:$0xff]  ;;  %v384_v19 = vld [vmem:[#allocation7 + $0x8] sm:$0xff]  ;;  %p819_p1 = scmp.ne.s32.totalorder %s817_s8, %s818_s13  ;;  %p824_p8 = scmp.lt.s32.totalorder %s822_s29, %s818_s13 }
  0x3f   : > { %378 = vmatpush.msra.mxu0 %v347_v6  ;;  %v383_v20 = vld [vmem:[#allocation7] sm:$0xff]  ;;  %v439_v21 = vld [vmem:[#allocation8 + $0x78] sm:$0xff]  ;;  %v438_v22 = vld [vmem:[#allocation8 + $0x70] sm:$0xff] }
  0x40   : > { %595 = vmatmul.msk.f32.vlgmr.msra.gmra.mxu0 %vm355_vm1, %v346_v7  ;;  %406 = vmatpush.msra.mxu1 %v395_v8  ;;  %v437_v23 = vld [vmem:[#allocation8 + $0x68] sm:$0xff]  ;;  %v436_v24 = vld [vmem:[#allocation8 + $0x60] sm:$0xff]  ;;  %v435_v25 = vld [vmem:[#allocation8 + $0x58] sm:$0xff]  ;;  %p820_p3 = pnand %p819_p1, %p999_p13  ;;  %p825_p7 = por %p824_p8, %p823_p12 }
  0x41   : > { %444 = vmatpush.msra.mxu2 %v439_v21  ;;  %v434_v26 = vld [vmem:[#allocation8 + $0x50] sm:$0xff]  ;;  %v433_v27 = vld [vmem:[#allocation8 + $0x48] sm:$0xff]  ;;  %v432_v28 = vld [vmem:[#allocation8 + $0x40] sm:$0xff] }
  0x42   : > { %407 = vmatpush.msra.mxu1 %v394_v9  ;;  %v431_v29 = vld [vmem:[#allocation8 + $0x38] sm:$0xff]  ;;  %v430_v30 = vld [vmem:[#allocation8 + $0x30] sm:$0xff]  ;;  %v429_v31 = vld [vmem:[#allocation8 + $0x28] sm:$0xff]  ;;  %p821_p5 = pneg %p820_p3 }
  0x43   : > { %445 = vmatpush.msra.mxu2 %v438_v22  ;;  %v428_v32 = vld [vmem:[#allocation8 + $0x20] sm:$0xff]  ;;  %v427_v33 = vld [vmem:[#allocation8 + $0x18] sm:$0xff]  ;;  %v679_v34 = vld [vmem:[%s1094_s2] ss:$0 sm:$0xff] }
  0x44   : > { %408 = vmatpush.msra.mxu1 %v393_v10  ;;  %v426_v37 = vld [vmem:[#allocation8 + $0x10] sm:$0xff]  ;;  %v425_v38 = vld [vmem:[#allocation8 + $0x8] sm:$0xff]  ;;  %v424_v39 = vld [vmem:[#allocation8] sm:$0xff]  ;;  %p826_p9 = pnand %p825_p7, %p821_p5 }
  0x45   : > { %446 = vmatpush.msra.mxu2 %v437_v23  ;;  %v680_v40 = vld [vmem:[%s1096_s4] ss:$0 sm:$0xff] }
  0x46   : > { %409 = vmatpush.msra.mxu1 %v392_v11  ;;  %v681_v44 = vld [vmem:[%s1098_s6] ss:$0 sm:$0xff] }
  0x47   : > { %447 = vmatpush.msra.mxu2 %v436_v24 }
  0x48   : > { %410 = vmatpush.msra.mxu1 %v391_v12 }
  0x49   : > { %448 = vmatpush.msra.mxu2 %v435_v25 }
  0x4a   : > { %411 = vmatpush.msra.mxu1 %v390_v13 }
  0x4b   : > { %449 = vmatpush.msra.mxu2 %v434_v26 }
  0x4c   : > { %412 = vmatpush.msra.mxu1 %v389_v14 }
  0x4d   : > { %450 = vmatpush.msra.mxu2 %v433_v27 }
  0x4e   : > { %413 = vmatpush.msra.mxu1 %v388_v15 }
  0x4f   : > { %451 = vmatpush.msra.mxu2 %v432_v28 }
  0x50   : > { %414 = vmatpush.msra.mxu1 %v387_v16 }
  0x51   : > { %452 = vmatpush.msra.mxu2 %v431_v29 }
  0x52   : > { %415 = vmatpush.msra.mxu1 %v386_v17 }
  0x53   : > { %453 = vmatpush.msra.mxu2 %v430_v30 }
  0x54   : > { %416 = vmatpush.msra.mxu1 %v385_v18 }
  0x55   : > { %454 = vmatpush.msra.mxu2 %v429_v31 }
  0x56   : > { %417 = vmatpush.msra.mxu1 %v384_v19 }
  0x57   : > { %455 = vmatpush.msra.mxu2 %v428_v32 }
  0x58   : > { %418 = vmatpush.msra.mxu1 %v383_v20 }
  0x59   : > { %456 = vmatpush.msra.mxu2 %v427_v33 }
  0x5b   : > { %457 = vmatpush.msra.mxu2 %v426_v37 }
  0x5d   : > { %458 = vmatpush.msra.mxu2 %v425_v38 }
  0x5f   : > { %459 = vmatpush.msra.mxu2 %v424_v39 }
  0xbd   : > { %v380_v35 = vpop.f32.mrf.mxu0 }
  0xbe   : > { %v381_v36 = vadd.f32 %v679_v34, %v380_v35 }
  0xc0   : > { %419 = vmatmul.f32.vlgmr.msra.gmra.mxu1 %v381_v36 }
 0x13d   : > { %v420_v41 = vpop.f32.mrf.mxu1 }
 0x13e   : > { %v421_v42 = vadd.f32 %v680_v40, %v420_v41 }
 0x140   : > { %v423_v43 = vmax.f32 %v421_v42, 0.0 }
 0x142   : > { %460 = vmatmul.f32.vlgmr.msra.gmra.mxu2 %v423_v43 }
 0x1c5   : > { %v461_v45 = vpop.f32.mrf.mxu2 }
 0x1c6   : > { %v462_v46 = vadd.f32 %v681_v44, %v461_v45 }
 0x1c8   : > { %464 = vst [vmem:[%s345_s21] sm:$0xff] %v462_v46 }
 0x1c9   : > { %829 = shalt.err (!%p826_p9)
}
 0x1ca   : > { %614 = dma.vmem_to_hbm [thread:$0]  (%p999_p13), %s479_s18, 128, %s481_s1, %s466_s9  }
 0x1cb PF: > { %s492_s15 = sand.u32 1, %s864_s24   ;;  %p1108_p10 = scmp.ge.s32.totalorder %s876_s27, 2 }
 0x1cc   : > { %s493_s30 = scalar_lea.sflag [#allocation4], %s492_s15 }
 0x1cd   : > { %p631_p11 = pnand %p1108_p10, %p1004_p4 }
 0x1cf   : > { %p632_p0 = pneg %p631_p11 }
 0x1d1   : > { %859 = dma.done.wait (%p632_p0), %s493_s30, 128  }
 0x1d2   : > { %861 = vsyncadd (%p632_p0), %s493_s30, 4294967168  ;;  %p22_p2 = scmp.ge.s32.totalorder %s979_s10, 4   ;;  %s1109_s24 = smov %s868_s25 }
 0x1d3   : > { %s1110_s25 = smov %s872_s26  ;;  %s1111_s26 = smov %s991_s11 }
 0x1d4   : > { %s1112_s27 = smov %s979_s10  ;;  %24 = sbr.rel (!%p22_p2) target bundleno = 9 (0x9), region = 105 }
 0x1d9   :  { %499 = vsyncpa [#allocation3], 1 }
 0x1da   :  { %501 = vsyncpa [#allocation3 + $0x1], 1 }
 0x1db   :  { %502 = vsyncpa [#allocation6], 1 }
 0x1dc   :  { %503 = vsyncpa [#allocation9], 1 }
 0x1dd   :  { %504 = vsyncpa [#allocation4], 1 }
 0x1de   :  { %506 = vsyncpa [#allocation4 + $0x1], 1 }

// kernel: tpu_custom_call.1
= control target key start
LH: loop header
LB: loop body
LE: loop exit
PB: predicated region body
PF: predicated region fallthrough
CT: control target
= control target key end

     0   :  { %s1092_s0 = inlined_call_operand.hbm [shape: f32[16,26], index: 0, kind: input, shape index: {}]   ;;  %s1093_s1 = inlined_call_operand.hbm [shape: f32[26,128], index: 1, kind: input, shape index: {}]   ;;  %s1094_s2 = inlined_call_operand.vmem [shape: f32[1,128], index: 2, kind: input, shape index: {}]   ;;  %s1095_s3 = inlined_call_operand.hbm [shape: f32[128,128], index: 3, kind: input, shape index: {}]   ;;  %s1096_s4 = inlined_call_operand.vmem [shape: f32[1,128], index: 4, kind: input, shape index: {}]   ;;  %s1097_s5 = inlined_call_operand.hbm [shape: f32[128,128], index: 5, kind: input, shape index: {}]   ;;  %s1098_s6 = inlined_call_operand.vmem [shape: f32[1,128], index: 6, kind: input, shape index: {}]   ;;  %s1099_s7 = inlined_call_operand.hbm [shape: f32[16,128], index: 7, kind: output, shape index: {}]  }
   0x1   :  { %1100 = sst [smem:[#allocation15_spill]] %s1093_s1 }
   0x2   :  { %12 = vsyncpa [#allocation3], 0 }
   0x3   :  { %14 = vsyncpa [#allocation3 + $0x1], 0 }
   0x4   :  { %15 = vsyncpa [#allocation6], 0 }
   0x5   :  { %16 = vsyncpa [#allocation9], 0 }
   0x6   :  { %17 = vsyncpa [#allocation4], 0 }
   0x7   :  { %19 = vsyncpa [#allocation4 + $0x1], 0  ;;  %s923_s24 = smov 0   ;;  %s925_s25 = smov 0  }
   0x8   :  { %s927_s26 = smov 0   ;;  %s929_s27 = smov 0  }
   0x9 LB: > { %s1101_s1 = sld [smem:[#allocation15_spill]]  ;;  %s947_s8 = sadd.s32 4294967295, %s876_s27   ;;  %s876_s27 = sphi %s929_s27, %s1112_s27   ;;  %s872_s26 = sphi %s927_s26, %s1111_s26   ;;  %s868_s25 = sphi %s925_s25, %s1110_s25   ;;  %s864_s24 = sphi %s923_s24, %s1109_s24  }
   0xa   : > { %p581_p0 = scmp.ge.s32.totalorder %s876_s27, 1  ;;  %p46_p1 = scmp.eq.s32.totalorder %s947_s8, 0 }
   0xb   : > { %p208_p2 = scmp.lt.s32.totalorder %s876_s27, 3  ;;  %s878_s10 = smov [#allocation5]  }
   0xc   : > { %s221_s11 = sshll.u32 %s878_s10, 4  ;;  %s236_s14 = sshll.u32 %s1095_s3, 4  ;;  %s222_s11 = int_to_ptr.vmem [resolvable:$true] %s221_s11  ;;  %s237_s14 = int_to_ptr.hbm [resolvable:$true] %s236_s14 }
   0xd   : > { %p952_p3 = pnand %p581_p0, %p208_p2  ;;  %s253_s18 = sshll.u32 %s1097_s5, 4  ;;  %s254_s18 = int_to_ptr.hbm [resolvable:$true] %s253_s18 }
   0xe   : > { %s879_s19 = smov [#allocation7]   ;;  %s880_s21 = smov 128  }
   0xf   : > { %s219_s30 = sshll.u32 %s1101_s1, 4  ;;  %p616_p4 = pneg %p952_p3  ;;  %s220_s30 = int_to_ptr.hbm [resolvable:$true] %s219_s30 }
  0x10   : > { %s238_s20 = sshll.u32 %s879_s19, 4  ;;  %s881_s22 = smov 8   ;;  %s239_s20 = int_to_ptr.vmem [resolvable:$true] %s238_s20 }
  0x11   : > { %p964_p6 = pnand %p616_p4, %p46_p1  ;;  %s882_s23 = smov [#allocation8]  }
  0x12   : > { %s255_s28 = sshll.u32 %s882_s23, 4  ;;  %s580_s29 = sadd.s32 4294967294, %s876_s27   ;;  %s256_s28 = int_to_ptr.vmem [resolvable:$true] %s255_s28 }
  0x13   : > { %619 = dma.hbm_to_vmem [thread:$0]  (!%p964_p6), %s220_s30, 512, %s222_s11, [#allocation6], %s880_s21, %s880_s21, %s881_s22  }
  0x14   : > { %622 = dma.hbm_to_vmem [thread:$0]  (!%p964_p6), %s237_s14, 2048, %s239_s20, [#allocation6], %s880_s21, %s880_s21, %s881_s22  }
  0x15   : > { %625 = dma.hbm_to_vmem [thread:$0]  (!%p964_p6), %s254_s18, 2048, %s256_s28, [#allocation9], %s880_s21, %s880_s21, %s881_s22  }
  0x16   : > { %s979_s10 = sadd.s32 1, %s876_s27   ;;  %s32_s12 = sadd.s32 1, %s872_s26 }
  0x17   : > { %s29_s30 = ssub.s32 %s876_s27, %s979_s10  ;;  %p39_p7 = scmp.ne.s32.totalorder %s872_s26, %s868_s25 }
  0x18   : > { %p30_p8 = scmp.eq.s32.totalorder %s29_s30, 0  ;;  %p40_p9 = scmp.eq.s32.totalorder %s876_s27, 0 }
  0x19   : > { %p45_p10 = scmp.ne.s32.totalorder %s868_s25, %s864_s24  ;;  %p195_p11 = scmp.eq.s32.totalorder %s947_s8, 1 }
  0x1a   : > { %s991_s11 = scalar_select %p30_p8, %s872_s26, %s32_s12  }
  0x1b   : > { %p995_p12 = por %p46_p1, %p45_p10  ;;  %p999_p13 = por %p195_p11, %p39_p7 }
  0x1c   : > { %p201_p0 = scmp.eq.s32.totalorder %s580_s29, 1  ;;  %p41_p2 = por %p40_p9, %p39_p7 }
  0x1d   : > { %s272_s15 = sand.u32 1, %s872_s26   ;;  %p637_p6 = scmp.lt.s32.totalorder %s876_s27, 2 }
  0x1e   : > { %p1004_p4 = por %p201_p0, %p45_p10  ;;  %s586_s17 = sshll.u32 %s272_s15, 3 }
  0x1f   : > { %s587_s18 = sshll.u32 %s876_s27, 3  ;;  %s276_s23 = scalar_lea.vmem [#allocation2], %s586_s17 }
  0x20   : > { %s280_s21 = scalar_lea.hbm %s1092_s0, %s587_s18  ;;  %s284_s28 = sshll.u32 %s276_s23, 4  ;;  %s285_s28 = int_to_ptr.vmem [resolvable:$true] %s284_s28 }
  0x21   : > { %s282_s22 = sshll.u32 %s280_s21, 4  ;;  %p1013_p8 = pnand %p637_p6, %p41_p2  ;;  %s283_s22 = int_to_ptr.hbm [resolvable:$true] %s282_s22 }
  0x22   : > { %s273_s12 = scalar_lea.sflag [#allocation3], %s272_s15  ;;  %s772_s30 = sshra.s32 %s283_s22, 4  ;;  %s773_s30 = int_to_ptr.hbm [resolvable:$true] %s772_s30 }
  0x23   : > { %s774_s1 = scalar_lea.hbm %s773_s30, 8  ;;  %p776_p9 = pneg %p1013_p8 }
  0x24   : > { %p775_p7 = scmp.ne.s32.totalorder %s773_s30, %s774_s1  ;;  %s779_s17 = scalar_lea.hbm %s1092_s0, 16 }
  0x25   : > { %p780_p0 = scmp.lt.s32.totalorder %s773_s30, %s1092_s0  ;;  %p781_p2 = scmp.lt.s32.totalorder %s779_s17, %s774_s1 }
  0x26   : > { %p777_p10 = pnand %p776_p9, %p775_p7 }
  0x27   : > { %p782_p6 = por %p781_p2, %p780_p0 }
  0x28   : > { %p778_p11 = pneg %p777_p10 }
  0x2a   : > { %p783_p5 = pnand %p782_p6, %p778_p11 }
  0x2c   : > { %786 = shalt.err (!%p783_p5)
}
  0x2d   : > { %629 = dma.hbm_to_vmem [thread:$0]  (!%p1013_p8), %s283_s22, 128, %s285_s28, %s273_s12  }
  0x2e   : > { %293 = sbr.rel (%p952_p3) target bundleno = 459 (0x1cb), region = 48  ;;  %s1030_s15 = sand.u32 (!%p952_p3), 1, %s868_s25  }
  0x2f   : > { %s589_s23 = sshll.u32 (!%p952_p3), %s1030_s15, 3  ;;  %s296_s18 = scalar_lea.sflag (!%p952_p3), [#allocation3], %s1030_s15 }
  0x30   : > { %s299_s1 = scalar_lea.vmem (!%p952_p3), [#allocation2], %s589_s23 }
  0x33   : > { %847 = dma.done.wait (%p995_p12), %s296_s18, 128  }
  0x34   : > { %849 = vsyncadd (%p995_p12), %s296_s18, 4294967168 }
  0x35   : > { %851 = dma.done.wait (%p46_p1), [#allocation6], 2560  }
  0x36   : > { %853 = vsyncadd (%p46_p1), [#allocation6], 4294964736 }
  0x37   : > { %855 = dma.done.wait (%p46_p1), [#allocation9], 2048  }
  0x38   : > { %857 = vsyncadd (%p46_p1), [#allocation9], 4294965248  ;;  %vm359_vm0 = vcmask 1041408   ;;  %v350_v0 = vld [vmem:[#allocation5 + $0x18] sm:$0x3]  ;;  %v349_v1 = vld [vmem:[#allocation5 + $0x10] sm:$0xff] }
  0x39   : > { %594 = vmatpush.msk.msra.mxu0 %vm359_vm0, %v350_v0  ;;  %v398_v2 = vld [vmem:[#allocation7 + $0x78] sm:$0xff]  ;;  %v348_v3 = vld [vmem:[#allocation5 + $0x8] sm:$0xff]  ;;  %v397_v4 = vld [vmem:[#allocation7 + $0x70] sm:$0xff]  ;;  %vm355_vm1 = vcmask 211968   ;;  %s597_s29 = sshll.u32 %s947_s8, 3  ;;  %s345_s21 = scalar_lea.vmem [#allocation10], %s589_s23 }
  0x3a   : > { %403 = vmatpush.msra.mxu1 %v398_v2  ;;  %v396_v5 = vld [vmem:[#allocation7 + $0x68] sm:$0xff]  ;;  %v347_v6 = vld [vmem:[#allocation5] sm:$0xff]  ;;  %v346_v7 = vld [vmem:[%s299_s1] sm:$0xff]  ;;  %s476_s19 = scalar_lea.hbm %s1099_s7, %s597_s29  ;;  %s478_s18 = sshll.u32 %s345_s21, 4  ;;  %s479_s18 = int_to_ptr.vmem [resolvable:$true] %s478_s18 }
  0x3b   : > { %376 = vmatpush.msra.mxu0 %v349_v1  ;;  %v395_v8 = vld [vmem:[#allocation7 + $0x60] sm:$0xff]  ;;  %v394_v9 = vld [vmem:[#allocation7 + $0x58] sm:$0xff]  ;;  %v393_v10 = vld [vmem:[#allocation7 + $0x50] sm:$0xff]  ;;  %s480_s1 = sshll.u32 %s476_s19, 4  ;;  %s466_s9 = scalar_lea.sflag [#allocation4], %s1030_s15  ;;  %s481_s1 = int_to_ptr.hbm [resolvable:$true] %s480_s1 }
  0x3c   : > { %404 = vmatpush.msra.mxu1 %v397_v4  ;;  %v392_v11 = vld [vmem:[#allocation7 + $0x48] sm:$0xff]  ;;  %v391_v12 = vld [vmem:[#allocation7 + $0x40] sm:$0xff]  ;;  %v390_v13 = vld [vmem:[#allocation7 + $0x38] sm:$0xff]  ;;  %s816_s8 = sshra.s32 %s481_s1, 4  ;;  %s822_s29 = scalar_lea.hbm %s1099_s7, 16  ;;  %s817_s8 = int_to_ptr.hbm [resolvable:$true] %s816_s8 }
  0x3d   : > { %377 = vmatpush.msra.mxu0 %v348_v3  ;;  %v389_v14 = vld [vmem:[#allocation7 + $0x30] sm:$0xff]  ;;  %v388_v15 = vld [vmem:[#allocation7 + $0x28] sm:$0xff]  ;;  %v387_v16 = vld [vmem:[#allocation7 + $0x20] sm:$0xff]  ;;  %s818_s13 = scalar_lea.hbm %s817_s8, 8  ;;  %p823_p12 = scmp.lt.s32.totalorder %s817_s8, %s1099_s7 }
  0x3e   : > { %405 = vmatpush.msra.mxu1 %v396_v5  ;;  %v386_v17 = vld [vmem:[#allocation7 + $0x18] sm:$0xff]  ;;  %v385_v18 = vld [vmem:[#allocation7 + $0x10] sm:$0xff]  ;;  %v384_v19 = vld [vmem:[#allocation7 + $0x8] sm:$0xff]  ;;  %p819_p1 = scmp.ne.s32.totalorder %s817_s8, %s818_s13  ;;  %p824_p8 = scmp.lt.s32.totalorder %s822_s29, %s818_s13 }
  0x3f   : > { %378 = vmatpush.msra.mxu0 %v347_v6  ;;  %v383_v20 = vld [vmem:[#allocation7] sm:$0xff]  ;;  %v439_v21 = vld [vmem:[#allocation8 + $0x78] sm:$0xff]  ;;  %v438_v22 = vld [vmem:[#allocation8 + $0x70] sm:$0xff] }
  0x40   : > { %595 = vmatmul.msk.f32.vlgmr.msra.gmra.mxu0 %vm355_vm1, %v346_v7  ;;  %406 = vmatpush.msra.mxu1 %v395_v8  ;;  %v437_v23 = vld [vmem:[#allocation8 + $0x68] sm:$0xff]  ;;  %v436_v24 = vld [vmem:[#allocation8 + $0x60] sm:$0xff]  ;;  %v435_v25 = vld [vmem:[#allocation8 + $0x58] sm:$0xff]  ;;  %p820_p3 = pnand %p819_p1, %p999_p13  ;;  %p825_p7 = por %p824_p8, %p823_p12 }
  0x41   : > { %444 = vmatpush.msra.mxu2 %v439_v21  ;;  %v434_v26 = vld [vmem:[#allocation8 + $0x50] sm:$0xff]  ;;  %v433_v27 = vld [vmem:[#allocation8 + $0x48] sm:$0xff]  ;;  %v432_v28 = vld [vmem:[#allocation8 + $0x40] sm:$0xff] }
  0x42   : > { %407 = vmatpush.msra.mxu1 %v394_v9  ;;  %v431_v29 = vld [vmem:[#allocation8 + $0x38] sm:$0xff]  ;;  %v430_v30 = vld [vmem:[#allocation8 + $0x30] sm:$0xff]  ;;  %v429_v31 = vld [vmem:[#allocation8 + $0x28] sm:$0xff]  ;;  %p821_p5 = pneg %p820_p3 }
  0x43   : > { %445 = vmatpush.msra.mxu2 %v438_v22  ;;  %v428_v32 = vld [vmem:[#allocation8 + $0x20] sm:$0xff]  ;;  %v427_v33 = vld [vmem:[#allocation8 + $0x18] sm:$0xff]  ;;  %v679_v34 = vld [vmem:[%s1094_s2] ss:$0 sm:$0xff] }
  0x44   : > { %408 = vmatpush.msra.mxu1 %v393_v10  ;;  %v426_v37 = vld [vmem:[#allocation8 + $0x10] sm:$0xff]  ;;  %v425_v38 = vld [vmem:[#allocation8 + $0x8] sm:$0xff]  ;;  %v424_v39 = vld [vmem:[#allocation8] sm:$0xff]  ;;  %p826_p9 = pnand %p825_p7, %p821_p5 }
  0x45   : > { %446 = vmatpush.msra.mxu2 %v437_v23  ;;  %v680_v40 = vld [vmem:[%s1096_s4] ss:$0 sm:$0xff] }
  0x46   : > { %409 = vmatpush.msra.mxu1 %v392_v11  ;;  %v681_v44 = vld [vmem:[%s1098_s6] ss:$0 sm:$0xff] }
  0x47   : > { %447 = vmatpush.msra.mxu2 %v436_v24 }
  0x48   : > { %410 = vmatpush.msra.mxu1 %v391_v12 }
  0x49   : > { %448 = vmatpush.msra.mxu2 %v435_v25 }
  0x4a   : > { %411 = vmatpush.msra.mxu1 %v390_v13 }
  0x4b   : > { %449 = vmatpush.msra.mxu2 %v434_v26 }
  0x4c   : > { %412 = vmatpush.msra.mxu1 %v389_v14 }
  0x4d   : > { %450 = vmatpush.msra.mxu2 %v433_v27 }
  0x4e   : > { %413 = vmatpush.msra.mxu1 %v388_v15 }
  0x4f   : > { %451 = vmatpush.msra.mxu2 %v432_v28 }
  0x50   : > { %414 = vmatpush.msra.mxu1 %v387_v16 }
  0x51   : > { %452 = vmatpush.msra.mxu2 %v431_v29 }
  0x52   : > { %415 = vmatpush.msra.mxu1 %v386_v17 }
  0x53   : > { %453 = vmatpush.msra.mxu2 %v430_v30 }
  0x54   : > { %416 = vmatpush.msra.mxu1 %v385_v18 }
  0x55   : > { %454 = vmatpush.msra.mxu2 %v429_v31 }
  0x56   : > { %417 = vmatpush.msra.mxu1 %v384_v19 }
  0x57   : > { %455 = vmatpush.msra.mxu2 %v428_v32 }
  0x58   : > { %418 = vmatpush.msra.mxu1 %v383_v20 }
  0x59   : > { %456 = vmatpush.msra.mxu2 %v427_v33 }
  0x5b   : > { %457 = vmatpush.msra.mxu2 %v426_v37 }
  0x5d   : > { %458 = vmatpush.msra.mxu2 %v425_v38 }
  0x5f   : > { %459 = vmatpush.msra.mxu2 %v424_v39 }
  0xbd   : > { %v380_v35 = vpop.f32.mrf.mxu0 }
  0xbe   : > { %v381_v36 = vadd.f32 %v679_v34, %v380_v35 }
  0xc0   : > { %419 = vmatmul.f32.vlgmr.msra.gmra.mxu1 %v381_v36 }
 0x13d   : > { %v420_v41 = vpop.f32.mrf.mxu1 }
 0x13e   : > { %v421_v42 = vadd.f32 %v680_v40, %v420_v41 }
 0x140   : > { %v423_v43 = vmax.f32 %v421_v42, 0.0 }
 0x142   : > { %460 = vmatmul.f32.vlgmr.msra.gmra.mxu2 %v423_v43 }
 0x1c5   : > { %v461_v45 = vpop.f32.mrf.mxu2 }
 0x1c6   : > { %v462_v46 = vadd.f32 %v681_v44, %v461_v45 }
 0x1c8   : > { %464 = vst [vmem:[%s345_s21] sm:$0xff] %v462_v46 }
 0x1c9   : > { %829 = shalt.err (!%p826_p9)
}
 0x1ca   : > { %614 = dma.vmem_to_hbm [thread:$0]  (%p999_p13), %s479_s18, 128, %s481_s1, %s466_s9  }
 0x1cb PF: > { %s492_s15 = sand.u32 1, %s864_s24   ;;  %p1108_p10 = scmp.ge.s32.totalorder %s876_s27, 2 }
 0x1cc   : > { %s493_s30 = scalar_lea.sflag [#allocation4], %s492_s15 }
 0x1cd   : > { %p631_p11 = pnand %p1108_p10, %p1004_p4 }
 0x1cf   : > { %p632_p0 = pneg %p631_p11 }
 0x1d1   : > { %859 = dma.done.wait (%p632_p0), %s493_s30, 128  }
 0x1d2   : > { %861 = vsyncadd (%p632_p0), %s493_s30, 4294967168  ;;  %p22_p2 = scmp.ge.s32.totalorder %s979_s10, 4   ;;  %s1109_s24 = smov %s868_s25 }
 0x1d3   : > { %s1110_s25 = smov %s872_s26  ;;  %s1111_s26 = smov %s991_s11 }
 0x1d4   : > { %s1112_s27 = smov %s979_s10  ;;  %24 = sbr.rel (!%p22_p2) target bundleno = 9 (0x9), region = 105 }
 0x1d9   :  { %499 = vsyncpa [#allocation3], 1 }
 0x1da   :  { %501 = vsyncpa [#allocation3 + $0x1], 1 }
 0x1db   :  { %502 = vsyncpa [#allocation6], 1 }
 0x1dc   :  { %503 = vsyncpa [#allocation9], 1 }
 0x1dd   :  { %504 = vsyncpa [#allocation4], 1 }
 0x1de   :  { %506 = vsyncpa [#allocation4 + $0x1], 1 }

</bundles_post_ra>
